<compile_context>
chip_gen: v7x
topology: tpu7x:2x2x1
jax: 0.10.0
libtpu: 0.0.40
codegen_flags: <defaults>
</compile_context>

<pallas_src>
import functools

import jax
import jax.numpy as jnp
from jax.experimental import pallas as pl
from jax.experimental.pallas import tpu as pltpu


# --------------------------------------------------------------------------
# Kernels
# --------------------------------------------------------------------------
def _sliding_mean_norm_kernel(x_ref, out_ref, xpad_ref, *, sw_len, pad_len, w):
    """One row-block: out = x - sliding_mean(reflect_pad(x), sw_len).

    x_ref:    (R, W)               input block (any float dtype).
    out_ref:  (R, W)               output block.
    xpad_ref: (R, W + sw_len - 1)  f32 VMEM scratch, reflect-padded rows.
    """
    # Upcast once (bf16 -> f32) while staging the block into the scratch.
    xpad_ref[:, pad_len:pad_len + w] = x_ref[...].astype(jnp.float32)

    # Reflect halos (matches nn.ReflectionPad1d((pad_len, pad_len - 1))).
    # Left:  xpad[i] = x[pad_len - i]          for i in [0, pad_len)
    for i in range(pad_len):
        c = pad_len - i
        xpad_ref[:, i:i + 1] = x_ref[:, c:c + 1].astype(jnp.float32)
    # Right: xpad[pad_len + w + j] = x[w-2-j]  for j in [0, pad_len - 1)
    for j in range(pad_len - 1):
        c = w - 2 - j
        xpad_ref[:, pad_len + w + j:pad_len + w + j + 1] = (
            x_ref[:, c:c + 1].astype(jnp.float32))

    # Sliding-window sum: sw_len statically shifted vector loads from the
    # scratch ref + VPU adds.
    # TODO(synk): for large sw_len (>~32) switch to a cumsum-based sliding sum.
    acc = xpad_ref[:, 0:w]
    for k in range(1, sw_len):
        acc = acc + xpad_ref[:, k:k + w]

    x = xpad_ref[:, pad_len:pad_len + w]          # original rows, already f32
    out_ref[...] = (x - acc * (1.0 / sw_len)).astype(out_ref.dtype)


def _global_mean_norm_kernel(x_ref, out_ref):
    """Fallback branch (W <= sw_len): out = x - mean(x, axis=-1, keepdims=True)."""
    x = x_ref[...].astype(jnp.float32)
    m = jnp.mean(x, axis=-1, keepdims=True)
    out_ref[...] = (x - m).astype(out_ref.dtype)


# --------------------------------------------------------------------------
# Tiling helper
# --------------------------------------------------------------------------
def _choose_row_tile(rows, w, sw_len, itemsize, row_align,
                     vmem_budget_bytes=16 * 1024 * 1024):
    """Largest row tile whose VMEM footprint stays inside a conservative budget
    that is valid on v5e/v6e/v7x: double-buffered in/out blocks + the f32
    reflect scratch + ~2 f32 temporaries per row."""
    per_row = 4 * w * itemsize + 4 * (w + sw_len) + 8 * w
    r = vmem_budget_bytes // max(per_row, 1)
    r = int(min(max(r, row_align), rows, 1024))
    if r < rows:  # interior blocks must keep the sublane multiple
        r = max(row_align, (r // row_align) * row_align)
    return r


# --------------------------------------------------------------------------
# Wrapper
# --------------------------------------------------------------------------
def sliding_window_mean_norm(x: jax.Array, sw_len: int, *, row_tile=None) -> jax.Array:
    """JAX/Pallas equivalent of SlidingWindowMeanNorm.forward.  x: (N, C, W)."""
    if sw_len < 2 or sw_len % 2 != 0:
        raise ValueError(
            "sw_len must be an even integer >= 2: the PyTorch module's "
            "ReflectionPad1d((swLen//2, swLen//2 - 1)) only produces a W-length "
            f"sliding mean for even swLen (got {sw_len}).")

    n, c, w = x.shape
    pad_len = sw_len // 2
    rows = n * c
    x2d = x.reshape(rows, w)

    itemsize = jnp.dtype(x.dtype).itemsize
    row_align = 8 if itemsize >= 4 else 16        # f32: 8-row sublanes, bf16: 16
    r_tile = row_tile if row_tile is not None else _choose_row_tile(
        rows, w, sw_len, itemsize, row_align)
    grid = (pl.cdiv(rows, r_tile),)

    compiler_params = pltpu.CompilerParams(
        dimension_semantics=("parallel",),        # v7x: shard rows over both TCs
        vmem_limit_bytes=32 * 1024 * 1024,        # explicit; covers v5e's 16 MiB default
    )
    # Full time axis per block (legal: last block dim equals the array dim);
    # stores are lane-dense whenever W is a multiple of 128.  W is deliberately
    # not padded in the wrapper: that would add extra HBM passes to a purely
    # memory-bound op.
    block_in = pl.BlockSpec((r_tile, w), lambda i: (i, 0))
    block_out = pl.BlockSpec((r_tile, w), lambda i: (i, 0))

    if w > sw_len:
        if pad_len >= w:
            raise ValueError("reflection padding requires sw_len // 2 < W")
        kernel = functools.partial(
            _sliding_mean_norm_kernel, sw_len=sw_len, pad_len=pad_len, w=w)
        out2d = pl.pallas_call(
            kernel,
            out_shape=jax.ShapeDtypeStruct((rows, w), x.dtype),
            grid=grid,
            in_specs=[block_in],
            out_specs=block_out,
            scratch_shapes=[pltpu.VMEM((r_tile, w + sw_len - 1), jnp.float32)],
            compiler_params=compiler_params,
        )(x2d)
    else:
        out2d = pl.pallas_call(
            _global_mean_norm_kernel,
            out_shape=jax.ShapeDtypeStruct((rows, w), x.dtype),
            grid=grid,
            in_specs=[block_in],
            out_specs=block_out,
            compiler_params=compiler_params,
        )(x2d)

    return out2d.reshape(n, c, w)


# --------------------------------------------------------------------------
# Pure-JAX reference (sanity check only)
# --------------------------------------------------------------------------
def _reference(x, sw_len):
    pad_len = sw_len // 2
    w = x.shape[-1]
    if w > sw_len:
        xpad = jnp.pad(x, ((0, 0), (0, 0), (pad_len, pad_len - 1)), mode="reflect")
        windows = jnp.stack([xpad[..., k:k + w] for k in range(sw_len)], axis=0)
        sw_mean = jnp.mean(windows, axis=0)
    else:
        sw_mean = jnp.mean(x, axis=-1, keepdims=True)
    return x - sw_mean


if __name__ == "__main__":
    SW_LEN = 6  # swLen from the module's __init__ (even, as required by the module)

    # 1) Main sliding-window path (W > swLen), f32.
    N, C, W = 2, 4, 16
    x = jax.random.normal(jax.random.PRNGKey(0), (N, C, W), dtype=jnp.float32)
    out = jax.block_until_ready(sliding_window_mean_norm(x, SW_LEN))
    assert out.shape == (N, C, W)
    assert jnp.max(jnp.abs(out - _reference(x, SW_LEN))) < 1e-5

    # 2) Fallback path (W <= swLen): global mean over the time axis.
    x_small = jax.random.normal(jax.random.PRNGKey(1), (N, C, 4), dtype=jnp.float32)
    out_small = jax.block_until_ready(sliding_window_mean_norm(x_small, SW_LEN))
    assert jnp.max(jnp.abs(out_small - _reference(x_small, SW_LEN))) < 1e-5

    # 3) bf16 input (single in-kernel upcast, f32 accumulation).
    x_bf16 = jax.random.normal(jax.random.PRNGKey(2), (N, C, W), dtype=jnp.bfloat16)
    out_bf16 = jax.block_until_ready(sliding_window_mean_norm(x_bf16, SW_LEN))
    ref_bf16 = _reference(x_bf16.astype(jnp.float32), SW_LEN)
    assert jnp.max(jnp.abs(out_bf16.astype(jnp.float32) - ref_bf16)) < 5e-2

    # 4) Multi-step row grid (forced small row tile), rows divide evenly.
    x_multi = jax.random.normal(jax.random.PRNGKey(3), (6, 4, W), dtype=jnp.float32)
    out_multi = jax.block_until_ready(
        sliding_window_mean_norm(x_multi, SW_LEN, row_tile=8))
    assert jnp.max(jnp.abs(out_multi - _reference(x_multi, SW_LEN))) < 1e-5

    # 5) Ragged last row block (rows % row_tile != 0).
    x_rag = jax.random.normal(jax.random.PRNGKey(4), (5, 4, W), dtype=jnp.float32)
    out_rag = jax.block_until_ready(
        sliding_window_mean_norm(x_rag, SW_LEN, row_tile=8))
    assert jnp.max(jnp.abs(out_rag - _reference(x_rag, SW_LEN))) < 1e-5

    print("KERNEL_OK")
</pallas_src>

<mosaic_0001>
module attributes {stable_mosaic.version = 11 : i64} {
  func.func @_sliding_mean_norm_kernel(%arg0: i32, %arg1: memref<8x16xf32, #tpu.memory_space<vmem>>, %arg2: memref<8x16xf32, #tpu.memory_space<vmem>>, %arg3: memref<8x21xf32, #tpu.memory_space<vmem>>) attributes {dimension_semantics = [#tpu.dimension_semantics<parallel>], iteration_bounds = array<i64: 1>, scalar_prefetch = 0 : i64, scratch_operands = 1 : i64, tpu.core_type = #tpu.core_type<tc>, window_params = [{transform_indices = @transform_0, window_bounds = array<i64: 8, 16>}, {transform_indices = @transform_1, window_bounds = array<i64: 8, 16>}]} {
    %c0 = arith.constant 0 : index
    %c0_0 = arith.constant 0 : index
    %0 = vector.load %arg1[%c0, %c0_0] : memref<8x16xf32, #tpu.memory_space<vmem>>, vector<8x16xf32>
    %c0_1 = arith.constant 0 : index
    %c3 = arith.constant 3 : index
    %1 = vector.load %arg3[%c0_1, %c3] : memref<8x21xf32, #tpu.memory_space<vmem>>, vector<8x16xf32>
    tpu.vector_store %arg3[%c0_1, %c3], %0 {strides = array<i32>} : memref<8x21xf32, #tpu.memory_space<vmem>>, vector<8x16xf32>,
    %c0_2 = arith.constant 0 : index
    %c3_3 = arith.constant 3 : index
    %2 = vector.load %arg1[%c0_2, %c3_3] : memref<8x16xf32, #tpu.memory_space<vmem>>, vector<8x1xf32>
    %c0_4 = arith.constant 0 : index
    %c0_5 = arith.constant 0 : index
    %3 = vector.load %arg3[%c0_4, %c0_5] : memref<8x21xf32, #tpu.memory_space<vmem>>, vector<8x1xf32>
    tpu.vector_store %arg3[%c0_4, %c0_5], %2 {strides = array<i32>} : memref<8x21xf32, #tpu.memory_space<vmem>>, vector<8x1xf32>,
    %c0_6 = arith.constant 0 : index
    %c2 = arith.constant 2 : index
    %4 = vector.load %arg1[%c0_6, %c2] : memref<8x16xf32, #tpu.memory_space<vmem>>, vector<8x1xf32>
    %c0_7 = arith.constant 0 : index
    %c1 = arith.constant 1 : index
    %5 = vector.load %arg3[%c0_7, %c1] : memref<8x21xf32, #tpu.memory_space<vmem>>, vector<8x1xf32>
    tpu.vector_store %arg3[%c0_7, %c1], %4 {strides = array<i32>} : memref<8x21xf32, #tpu.memory_space<vmem>>, vector<8x1xf32>,
    %c0_8 = arith.constant 0 : index
    %c1_9 = arith.constant 1 : index
    %6 = vector.load %arg1[%c0_8, %c1_9] : memref<8x16xf32, #tpu.memory_space<vmem>>, vector<8x1xf32>
    %c0_10 = arith.constant 0 : index
    %c2_11 = arith.constant 2 : index
    %7 = vector.load %arg3[%c0_10, %c2_11] : memref<8x21xf32, #tpu.memory_space<vmem>>, vector<8x1xf32>
    tpu.vector_store %arg3[%c0_10, %c2_11], %6 {strides = array<i32>} : memref<8x21xf32, #tpu.memory_space<vmem>>, vector<8x1xf32>,
    %c0_12 = arith.constant 0 : index
    %c14 = arith.constant 14 : index
    %8 = vector.load %arg1[%c0_12, %c14] : memref<8x16xf32, #tpu.memory_space<vmem>>, vector<8x1xf32>
    %c0_13 = arith.constant 0 : index
    %c19 = arith.constant 19 : index
    %9 = vector.load %arg3[%c0_13, %c19] : memref<8x21xf32, #tpu.memory_space<vmem>>, vector<8x1xf32>
    tpu.vector_store %arg3[%c0_13, %c19], %8 {strides = array<i32>} : memref<8x21xf32, #tpu.memory_space<vmem>>, vector<8x1xf32>,
    %c0_14 = arith.constant 0 : index
    %c13 = arith.constant 13 : index
    %10 = vector.load %arg1[%c0_14, %c13] : memref<8x16xf32, #tpu.memory_space<vmem>>, vector<8x1xf32>
    %c0_15 = arith.constant 0 : index
    %c20 = arith.constant 20 : index
    %11 = vector.load %arg3[%c0_15, %c20] : memref<8x21xf32, #tpu.memory_space<vmem>>, vector<8x1xf32>
    tpu.vector_store %arg3[%c0_15, %c20], %10 {strides = array<i32>} : memref<8x21xf32, #tpu.memory_space<vmem>>, vector<8x1xf32>,
    %c0_16 = arith.constant 0 : index
    %c0_17 = arith.constant 0 : index
    %12 = vector.load %arg3[%c0_16, %c0_17] : memref<8x21xf32, #tpu.memory_space<vmem>>, vector<8x16xf32>
    %c0_18 = arith.constant 0 : index
    %c1_19 = arith.constant 1 : index
    %13 = vector.load %arg3[%c0_18, %c1_19] : memref<8x21xf32, #tpu.memory_space<vmem>>, vector<8x16xf32>
    %14 = arith.addf %12, %13 : vector<8x16xf32>
    %c0_20 = arith.constant 0 : index
    %c2_21 = arith.constant 2 : index
    %15 = vector.load %arg3[%c0_20, %c2_21] : memref<8x21xf32, #tpu.memory_space<vmem>>, vector<8x16xf32>
    %16 = arith.addf %14, %15 : vector<8x16xf32>
    %c0_22 = arith.constant 0 : index
    %c3_23 = arith.constant 3 : index
    %17 = vector.load %arg3[%c0_22, %c3_23] : memref<8x21xf32, #tpu.memory_space<vmem>>, vector<8x16xf32>
    %18 = arith.addf %16, %17 : vector<8x16xf32>
    %c0_24 = arith.constant 0 : index
    %c4 = arith.constant 4 : index
    %19 = vector.load %arg3[%c0_24, %c4] : memref<8x21xf32, #tpu.memory_space<vmem>>, vector<8x16xf32>
    %20 = arith.addf %18, %19 : vector<8x16xf32>
    %c0_25 = arith.constant 0 : index
    %c5 = arith.constant 5 : index
    %21 = vector.load %arg3[%c0_25, %c5] : memref<8x21xf32, #tpu.memory_space<vmem>>, vector<8x16xf32>
    %22 = arith.addf %20, %21 : vector<8x16xf32>
    %c0_26 = arith.constant 0 : index
    %c3_27 = arith.constant 3 : index
    %23 = vector.load %arg3[%c0_26, %c3_27] : memref<8x21xf32, #tpu.memory_space<vmem>>, vector<8x16xf32>
    %cst = arith.constant 0.166666672 : f32
    %24 = vector.broadcast %cst : f32 to vector<8x16xf32>
    %25 = arith.mulf %22, %24 : vector<8x16xf32>
    %26 = arith.subf %23, %25 : vector<8x16xf32>
    %c0_28 = arith.constant 0 : index
    %c0_29 = arith.constant 0 : index
    %27 = vector.load %arg2[%c0_28, %c0_29] : memref<8x16xf32, #tpu.memory_space<vmem>>, vector<8x16xf32>
    tpu.vector_store %arg2[%c0_28, %c0_29], %26 {strides = array<i32>} : memref<8x16xf32, #tpu.memory_space<vmem>>, vector<8x16xf32>,
    return
  }
  func.func @transform_0(%arg0: i32) -> (i32, i32) {
    %c0_i32 = arith.constant 0 : i32
    %c0_i32_0 = arith.constant 0 : i32
    return %arg0, %c0_i32 : i32, i32
  }
  func.func @transform_1(%arg0: i32) -> (i32, i32) {
    %c0_i32 = arith.constant 0 : i32
    %c0_i32_0 = arith.constant 0 : i32
    return %arg0, %c0_i32 : i32, i32
  }
}

</mosaic_0001>

<bundles_post_ra>
// kernel: tpu_custom_call.1
= control target key start
LH: loop header
LB: loop body
LE: loop exit
PB: predicated region body
PF: predicated region fallthrough
CT: control target
= control target key end

     0   :  { %6 = vsyncpa [#allocation4], 0  ;;  %s223_s0 = inlined_call_operand.hbm [shape: f32[8,16], index: 0, kind: input, shape index: {}]   ;;  %s224_s1 = inlined_call_operand.hbm [shape: f32[8,16], index: 1, kind: output, shape index: {}]  }
   0x1   :  { %7 = vsyncpa [#allocation5], 0  ;;  %s171_s6 = smov [#allocation3]   ;;  %s123_s10 = scalar_lea.hbm %s223_s0, 128 }
   0x2   :  { %s14_s7 = sshll.u32 %s171_s6, 4  ;;  %p124_p0 = scmp.ne.s32.totalorder %s223_s0, %s123_s10  ;;  %s15_s7 = int_to_ptr.vmem [resolvable:$true] %s14_s7 }
   0x3   :  { %p127_p1 = scmp.lt.u32.totalorder %s123_s10, %s223_s0 }
   0x5   :  { %p129_p2 = pnand %p127_p1, %p124_p0 }
   0x7   :  { %132 = shalt.err (!%p129_p2)
}
   0x8   :  { %s133_s15 = scalar_lea.vmem %s15_s7, 128  ;;  %p138_p4 = scmp.lt.s32.totalorder %s15_s7, %s15_s7 }
   0x9   :  { %p134_p3 = scmp.ne.s32.totalorder %s15_s7, %s133_s15  ;;  %p139_p5 = scmp.lt.s32.totalorder %s133_s15, %s133_s15 }
   0xb   :  { %p140_p6 = por %p139_p5, %p138_p4 }
   0xd   :  { %p141_p7 = pnand %p140_p6, %p134_p3 }
   0xf   :  { %144 = shalt.err (!%p141_p7)
}
  0x10   :  { %17 = dma.hbm_to_vmem [thread:$0]  %s223_s0, 128, %s15_s7, [#allocation4]  }
  0x11   :  { %167 = dma.done.wait [#allocation4], 128  }
  0x12   :  { %168 = vsyncadd [#allocation4], 4294967168  ;;  %v21_v0 = vld [vmem:[#allocation3] sm:$0xff]  ;;  %s172_s18 = smov 3   ;;  %s173_s19 = smov 127   ;;  %vm26_vm0 = vcmask 154648  }
  0x13   :  { %23 = vrot.lane.b32.xlu0 %v21_v0, %s172_s18  ;;  %37 = vrot.lane.b32.xlu1 %v21_v0, %s173_s19  ;;  %s174_s20 = smov 125   ;;  %s175_s21 = smov 1   ;;  %vm33_vm1 = vcmask 7168   ;;  %vm40_vm2 = vcmask 15368   ;;  %vm47_vm3 = vcmask 23568   ;;  %vm54_vm4 = vcmask 162968  }
  0x14   :  { %s176_s22 = smov 5   ;;  %s177_s23 = smov 7   ;;  %vm61_vm5 = vcmask 171168   ;;  %vm95_vm6 = vcmask 130048  }
  0x15   :  { %s178_s0 = smov 126   ;;  %s179_s24 = smov 124  }
  0x16   :  { %s180_s25 = smov 123   ;;  %s181_s26 = smov [#allocation6]  }
  0x17   :  { %30 = vrot.lane.b32.xlu0 %v21_v0, %s174_s20  ;;  %44 = vrot.lane.b32.xlu1 %v21_v0, %s175_s21  ;;  %s103_s27 = sshll.u32 %s181_s26, 4  ;;  %s104_s27 = int_to_ptr.vmem [resolvable:$true] %s103_s27 }
  0x18   :  { %s145_s28 = scalar_lea.vmem %s104_s27, 128  ;;  %p150_p9 = scmp.lt.s32.totalorder %s104_s27, %s104_s27 }
  0x19   :  { %p146_p8 = scmp.ne.s32.totalorder %s104_s27, %s145_s28  ;;  %p151_p10 = scmp.lt.s32.totalorder %s145_s28, %s145_s28 }
  0x1b   :  { %51 = vrot.lane.b32.xlu0 %v21_v0, %s176_s22  ;;  %58 = vrot.lane.b32.xlu1 %v21_v0, %s177_s23  ;;  %p152_p11 = por %p151_p10, %p150_p9 }
  0x1d   :  { %p153_p12 = pnand %p152_p11, %p146_p8 }
  0x85   :  { %v24_v1 = vpop.permute.xlu0 %23  ;;  %v38_v2 = vpop.permute.xlu1 %37 }
  0x86   :  { %27 = vst.msk [vmem:[#allocation2] sm:$0xff] %vm26_vm0, %v24_v1 }
  0x89   :  { %v31_v3 = vpop.permute.xlu0 %30  ;;  %v45_v4 = vpop.permute.xlu1 %44 }
  0x8a   :  { %34 = vst.msk [vmem:[#allocation2] sm:$0xff] %vm33_vm1, %v31_v3 }
  0x8b   :  { %41 = vst.msk [vmem:[#allocation2] sm:$0xff] %vm40_vm2, %v38_v2 }
  0x8c   :  { %48 = vst.msk [vmem:[#allocation2] sm:$0xff] %vm47_vm3, %v45_v4 }
  0x8d   :  { %v52_v5 = vpop.permute.xlu0 %51  ;;  %v59_v6 = vpop.permute.xlu1 %58 }
  0x8e   :  { %55 = vst.msk [vmem:[#allocation2] sm:$0xff] %vm54_vm4, %v52_v5 }
  0x8f   :  { %62 = vst.msk [vmem:[#allocation2] sm:$0xff] %vm61_vm5, %v59_v6 }
  0x96   :  { %v63_v7 = vld [vmem:[#allocation2] sm:$0xff] }
  0x97   :  { %69 = vrot.lane.b32.xlu1 %v63_v7, %s178_s0  ;;  %65 = vrot.lane.b32.xlu0 %v63_v7, %s173_s19 }
  0x9b   :  { %77 = vrot.lane.b32.xlu1 %v63_v7, %s179_s24  ;;  %73 = vrot.lane.b32.xlu0 %v63_v7, %s174_s20 }
  0x9f   :  { %81 = vrot.lane.b32.xlu0 %v63_v7, %s180_s25 }
 0x109   :  { %v70_v8 = vpop.permute.xlu1 %69  ;;  %v66_v9 = vpop.permute.xlu0 %65 }
 0x10a   :  { %v68_v10 = vadd.f32 %v66_v9, %v63_v7 }
 0x10c   :  { %v72_v11 = vadd.f32 %v70_v8, %v68_v10 }
 0x10d   :  { %v74_v12 = vpop.permute.xlu0 %73  ;;  %v78_v14 = vpop.permute.xlu1 %77 }
 0x10e   :  { %v76_v13 = vadd.f32 %v74_v12, %v72_v11 }
 0x110   :  { %v80_v15 = vadd.f32 %v78_v14, %v76_v13 }
 0x111   :  { %v82_v16 = vpop.permute.xlu0 %81 }
 0x112   :  { %v84_v17 = vadd.f32 %v82_v16, %v80_v15 }
 0x114   :  { %v85_v18 = vmul.f32 0.16666667, %v84_v17 }
 0x116   :  { %87 = vrot.lane.b32.xlu1 %v85_v18, %s172_s18 }
 0x188   :  { %v88_v19 = vpop.permute.xlu1 %87 }
 0x189   :  { %v90_v20 = vsub.f32 %v63_v7, %v88_v19 }
 0x18b   :  { %92 = vrot.lane.b32.xlu0 %v90_v20, %s174_s20 }
 0x1fd   :  { %v93_v21 = vpop.permute.xlu0 %92 }
 0x1fe   :  { %96 = vst.msk [vmem:[#allocation6] sm:$0xff] %vm95_vm6, %v93_v21 }
 0x1ff   :  { %156 = shalt.err (!%p153_p12)
}
 0x200   :  { %s157_s2 = scalar_lea.hbm %s224_s1, 128 }
 0x201   :  { %p158_p13 = scmp.ne.s32.totalorder %s224_s1, %s157_s2  ;;  %p161_p0 = scmp.lt.u32.totalorder %s157_s2, %s224_s1 }
 0x203   :  { %p163_p1 = pnand %p161_p0, %p158_p13 }
 0x205   :  { %166 = shalt.err (!%p163_p1)
}
 0x206   :  { %106 = dma.vmem_to_hbm [thread:$0]  %s104_s27, 128, %s224_s1, [#allocation5]  }
 0x207   :  { %169 = dma.done.wait [#allocation5], 128  }
 0x208   :  { %170 = vsyncadd [#allocation5], 4294967168 }
 0x209   :  { %110 = vsyncpa [#allocation4], 1 }
 0x20a   :  { %111 = vsyncpa [#allocation5], 1 }

</bundles_post_ra>
